<compile_context>
chip_gen: v7x
topology: tpu7x:2x2x1
jax: 0.10.0
libtpu: 0.0.40
codegen_flags: <defaults>
</compile_context>

<pallas_src>
import numpy as np
import jax
import jax.numpy as jnp
from jax import lax
from jax.experimental import pallas as pl
from jax.experimental.pallas import tpu as pltpu

# ----------------------------- problem constants -----------------------------
C_IN, C_OUT = 4, 8          # conv in/out channels
H, W = 16, 16               # board size
A = 7                       # actions
P = H * W                   # 256 spatial positions
K = C_OUT * P               # 2048 FC input features (PyTorch NCHW flatten order)
A_PAD = 128                 # lane-dense (padded) action dim
TB_MAX = 256                # max batch tile (sublane axis of the FC matmul)
NEG = -1e30                 # softmax mask for padded action lanes


# ------------------------------- Pallas kernel --------------------------------
def _fc_softmax_kernel(feat_ref, w2_ref, b2_ref, out_ref):
    """One batch tile: FC head + masked softmax, entirely MXU/VPU-light.

    feat_ref : (TB, K)      bf16  post-conv/ReLU features, NCHW flatten order
    w2_ref   : (K, A_PAD)   bf16  fc weight, resident (padded action cols = 0)
    b2_ref   : (1, A_PAD)   f32   fc bias (+ -inf mask on padded actions)
    out_ref  : (TB, A_PAD)  f32   softmax probabilities (padded lanes -> 0)
    """
    # Single long-K MXU matmul, f32 accumulation.
    logits = jnp.dot(feat_ref[...], w2_ref[...],
                     preferred_element_type=jnp.float32)          # (TB, A_PAD)
    logits = logits + b2_ref[...]                                 # bias + pad mask

    # Softmax over the (lane) action axis; exact normalization so rows sum to 1.
    m = jnp.max(logits, axis=-1, keepdims=True)
    e = jnp.exp(logits - m)
    s = jnp.sum(e, axis=-1, keepdims=True)
    out_ref[...] = e * pl.reciprocal(s, approx=False)


# ------------------------------ host / JAX glue --------------------------------
def make_policy_params():
    """Deterministic synthetic CNNPolicy parameters (PyTorch weight conventions)."""
    k1, k2, k3, k4 = jax.random.split(jax.random.PRNGKey(42), 4)
    conv_w = 0.10 * jax.random.normal(k1, (C_OUT, C_IN, 3, 3), jnp.float32)   # OIHW
    conv_b = 0.01 * jax.random.normal(k2, (C_OUT,), jnp.float32)
    fc_w = 0.05 * jax.random.normal(k3, (A, K), jnp.float32)                  # (out, in)
    fc_b = 0.01 * jax.random.normal(k4, (A,), jnp.float32)
    return dict(conv_w=conv_w, conv_b=conv_b, fc_w=fc_w, fc_b=fc_b)


def _tile_plan(b):
    """Pick the batch tile size. Small batches: one rounded-up tile (no wasted rows
    beyond 8-alignment). Large batches: TB_MAX tiles -> >=2 grid steps feed both
    v7x TensorCores via dimension_semantics=("parallel",)."""
    if b <= TB_MAX:
        return max(8, ((b + 7) // 8) * 8), 1
    return TB_MAX, (b + TB_MAX - 1) // TB_MAX


def _build_forward(params):
    """Prepare kernel-layout weights ONCE and return a jitted batched forward."""
    conv_w = jnp.asarray(params["conv_w"], jnp.float32)                        # OIHW
    conv_b = jnp.asarray(params["conv_b"], jnp.float32).reshape(1, C_OUT, 1, 1)
    # fc weight -> (K, A_PAD) bf16, zero-padded action columns
    w2 = (jnp.zeros((K, A_PAD), jnp.float32)
          .at[:, :A].set(jnp.asarray(params["fc_w"], jnp.float32).T)
          .astype(jnp.bfloat16))
    # fc bias row; padded action lanes carry the softmax mask
    b2 = jnp.full((1, A_PAD), NEG, jnp.float32).at[0, :A].set(
        jnp.asarray(params["fc_b"], jnp.float32))

    @jax.jit
    def forward(x):                                   # x: (B, H, W, C) float32
        b = x.shape[0]
        tb, n_tiles = _tile_plan(b)
        b_pad = tb * n_tiles

        # faithful LIME_wrapper behaviour: torch.reshape (NOT permute) NHWC -> NCHW
        x_nchw = jnp.reshape(x, (b, C_IN, H, W))

        # Conv + bias + ReLU on the MXU via XLA (perf review item 1).
        h = lax.conv_general_dilated(
            x_nchw, conv_w, window_strides=(1, 1), padding="SAME",
            dimension_numbers=("NCHW", "OIHW", "NCHW"),
            precision=lax.Precision.HIGHEST)
        h = jnp.maximum(h + conv_b, 0.0)
        feat = h.reshape(b, K)                        # PyTorch NCHW flatten order
        feat = jnp.pad(feat, ((0, b_pad - b), (0, 0))).astype(jnp.bfloat16)

        probs = pl.pallas_call(
            _fc_softmax_kernel,
            out_shape=jax.ShapeDtypeStruct((b_pad, A_PAD), jnp.float32),
            grid_spec=pltpu.PrefetchScalarGridSpec(
                num_scalar_prefetch=0,
                grid=(n_tiles,),
                in_specs=[
                    pl.BlockSpec((tb, K), lambda i: (i, 0)),        # batch-tiled feats
                    pl.BlockSpec((K, A_PAD), lambda i: (0, 0)),     # resident fc weight
                    pl.BlockSpec((1, A_PAD), lambda i: (0, 0)),     # resident bias/mask
                ],
                out_specs=pl.BlockSpec((tb, A_PAD), lambda i: (i, 0)),
            ),
            compiler_params=pltpu.CompilerParams(
                dimension_semantics=("parallel",),
                vmem_limit_bytes=32 * 1024 * 1024,
            ),
        )(feat, w2, b2)

        return probs[:b, :A]                          # drop batch/action padding

    return forward


def make_lime_wrapper(params):
    """Returns the faithful LIME_wrapper.forward: numpy in -> float64 numpy out."""
    fwd = _build_forward(params)

    def lime_wrapper_forward(x):
        x = jnp.asarray(np.asarray(x), jnp.float32)
        if x.ndim == 3:                               # unsqueeze(0)
            x = x[None]
        probs = fwd(x)
        # .type(torch.float64).detach().numpy() -> host-side float64 numpy array
        return np.asarray(jax.device_get(probs), dtype=np.float64)

    return lime_wrapper_forward
    # TODO(synk): the LIME explainer / SLIC segmentation machinery (lime_explanation)
    # is host-side scikit-image / sklearn code and has no Pallas equivalent.


# --------------------------- plain-JAX reference --------------------------------
def _im2col_same_3x3(x_nchw):
    B, C, h, w = x_nchw.shape
    xp = jnp.pad(x_nchw, ((0, 0), (0, 0), (1, 1), (1, 1)))
    cols = []
    for kh in range(3):
        for kw in range(3):
            cols.append(xp[:, :, kh:kh + h, kw:kw + w])
    patches = jnp.stack(cols, axis=2).reshape(B, C * 9, h * w)   # index c*9 + kh*3 + kw
    return jnp.transpose(patches, (0, 2, 1))                     # (B, P, C*9)


def _reference_forward(x, params):
    x = jnp.asarray(np.asarray(x), jnp.float32)
    if x.ndim == 3:
        x = x[None]
    B = x.shape[0]
    x = jnp.reshape(x, (B, C_IN, H, W))              # same (buggy) reshape as wrapper
    patches = _im2col_same_3x3(x)
    w1 = params["conv_w"].reshape(C_OUT, C_IN * 9).T
    h = jnp.maximum(jnp.einsum("bpc,co->bpo", patches, w1) + params["conv_b"], 0.0)
    feat = jnp.transpose(h, (0, 2, 1)).reshape(B, K)             # NCHW flatten order
    logits = feat @ params["fc_w"].T + params["fc_b"]
    return jax.nn.softmax(logits, axis=1)


# ----------------------------------- main ---------------------------------------
if __name__ == "__main__":
    params = make_policy_params()
    forward = make_lime_wrapper(params)

    B = 2
    x = jax.random.uniform(jax.random.PRNGKey(0), (B, H, W, C_IN), jnp.float32)

    # run the jitted kernel path once and block on the device result
    jax.block_until_ready(_build_forward(params)(x))

    out = forward(x)                                             # float64 numpy (B, 7)
    ref = np.asarray(_reference_forward(x, params), dtype=np.float64)
    assert out.shape == (B, A) and out.dtype == np.float64
    # bf16 MXU inputs on the FC -> slightly loose tolerance; conv is exact f32
    assert np.allclose(out, ref, atol=1e-2, rtol=1e-2)
    # exact softmax normalization (approx=False) -> rows sum to 1 at f32 precision
    assert np.allclose(out.sum(axis=1), 1.0, atol=1e-5)

    # single-sample (HWC) path used by LIME
    out1 = forward(np.asarray(x[0]))
    assert out1.shape == (1, A)
    assert np.allclose(out1[0], ref[0], atol=1e-2, rtol=1e-2)

    print("KERNEL_OK")
</pallas_src>

<mosaic_0001>
module attributes {stable_mosaic.version = 11 : i64} {
  func.func @_fc_softmax_kernel(%arg0: i32, %arg1: memref<8x2048xbf16, #tpu.memory_space<vmem>>, %arg2: memref<2048x128xbf16, #tpu.memory_space<vmem>>, %arg3: memref<1x128xf32, #tpu.memory_space<vmem>>, %arg4: memref<8x128xf32, #tpu.memory_space<vmem>>) attributes {dimension_semantics = [#tpu.dimension_semantics<parallel>], iteration_bounds = array<i64: 1>, scalar_prefetch = 0 : i64, scratch_operands = 0 : i64, tpu.core_type = #tpu.core_type<tc>, window_params = [{transform_indices = @transform_0, window_bounds = array<i64: 8, 2048>}, {pipeline_mode = #tpu.pipeline_mode<synchronous>, transform_indices = @transform_1, window_bounds = array<i64: 2048, 128>}, {pipeline_mode = #tpu.pipeline_mode<synchronous>, transform_indices = @transform_2, window_bounds = array<i64: 1, 128>}, {transform_indices = @transform_3, window_bounds = array<i64: 8, 128>}]} {
    %c0 = arith.constant 0 : index
    %c0_0 = arith.constant 0 : index
    %0 = vector.load %arg1[%c0, %c0_0] : memref<8x2048xbf16, #tpu.memory_space<vmem>>, vector<8x2048xbf16>
    %c0_1 = arith.constant 0 : index
    %c0_2 = arith.constant 0 : index
    %1 = vector.load %arg2[%c0_1, %c0_2] : memref<2048x128xbf16, #tpu.memory_space<vmem>>, vector<2048x128xbf16>
    %cst = arith.constant dense<0.000000e+00> : vector<8x128xf32>
    %2 = tpu.matmul %0, %1, %cst {dimension_numbers = #tpu.dot_dimension_numbers<[1], [0], [0], [1], [0, 0, 1, 1], [], []>} : vector<8x2048xbf16>, vector<2048x128xbf16>, vector<8x128xf32> -> vector<8x128xf32>
    %c0_3 = arith.constant 0 : index
    %c0_4 = arith.constant 0 : index
    %3 = vector.load %arg3[%c0_3, %c0_4] : memref<1x128xf32, #tpu.memory_space<vmem>>, vector<1x128xf32>
    %4 = vector.broadcast %3 : vector<1x128xf32> to vector<8x128xf32>
    %5 = arith.addf %2, %4 : vector<8x128xf32>
    %cst_5 = arith.constant dense<0xFF800000> : vector<8xf32>
    %6 = vector.multi_reduction <maximumf>, %5, %cst_5 [1] : vector<8x128xf32> to vector<8xf32>
    %7 = vector.shape_cast %6 : vector<8xf32> to vector<8x1xf32>
    %8 = vector.broadcast %7 : vector<8x1xf32> to vector<8x128xf32>
    %9 = arith.subf %5, %8 : vector<8x128xf32>
    %10 = math.exp %9 : vector<8x128xf32>
    %cst_6 = arith.constant dense<0.000000e+00> : vector<8xf32>
    %11 = vector.multi_reduction <add>, %10, %cst_6 [1] : vector<8x128xf32> to vector<8xf32>
    %12 = vector.shape_cast %11 : vector<8xf32> to vector<8x1xf32>
    %13 = tpu.reciprocal %12 : vector<8x1xf32> -> vector<8x1xf32>
    %14 = vector.broadcast %13 : vector<8x1xf32> to vector<8x128xf32>
    %15 = arith.mulf %10, %14 : vector<8x128xf32>
    %c0_7 = arith.constant 0 : index
    %c0_8 = arith.constant 0 : index
    %16 = vector.load %arg4[%c0_7, %c0_8] : memref<8x128xf32, #tpu.memory_space<vmem>>, vector<8x128xf32>
    tpu.vector_store %arg4[%c0_7, %c0_8], %15 {strides = array<i32>} : memref<8x128xf32, #tpu.memory_space<vmem>>, vector<8x128xf32>,
    return
  }
  func.func @transform_0(%arg0: i32) -> (i32, i32) {
    %c0_i32 = arith.constant 0 : i32
    %c0_i32_0 = arith.constant 0 : i32
    return %arg0, %c0_i32 : i32, i32
  }
  func.func @transform_1(%arg0: i32) -> (i32, i32) {
    %c0_i32 = arith.constant 0 : i32
    %c0_i32_0 = arith.constant 0 : i32
    %c0_i32_1 = arith.constant 0 : i32
    return %c0_i32, %c0_i32_0 : i32, i32
  }
  func.func @transform_2(%arg0: i32) -> (i32, i32) {
    %c0_i32 = arith.constant 0 : i32
    %c0_i32_0 = arith.constant 0 : i32
    %c0_i32_1 = arith.constant 0 : i32
    return %c0_i32, %c0_i32_0 : i32, i32
  }
  func.func @transform_3(%arg0: i32) -> (i32, i32) {
    %c0_i32 = arith.constant 0 : i32
    %c0_i32_0 = arith.constant 0 : i32
    return %arg0, %c0_i32 : i32, i32
  }
}

</mosaic_0001>

<bundles_post_ra>
// kernel: forward.1
= control target key start
LH: loop header
LB: loop body
LE: loop exit
PB: predicated region body
PF: predicated region fallthrough
CT: control target
= control target key end

     0   :  { %s2347_s1 = inlined_call_operand.vmem [shape: bf16[2048,128], index: 1, kind: input, shape index: {}]   ;;  %s2348_s0 = inlined_call_operand.vmem [shape: bf16[8,2048], index: 0, kind: input, shape index: {}]   ;;  %s2349_s2 = inlined_call_operand.vmem [shape: f32[1,128], index: 2, kind: input, shape index: {}]   ;;  %s2350_s3 = inlined_call_operand.vmem [shape: f32[8,128], index: 3, kind: output, shape index: {}]  }
   0x1   :  { %v1765_v0 = vld [vmem:[%s2347_s1 + $0x40] sm:$0xff]   ;;  %v1769_v4 = vld [vmem:[%s2347_s1 + $0x48] sm:$0xff]   ;;  %v1773_v8 = vld [vmem:[%s2347_s1 + $0x50] sm:$0xff]  }
   0x2   :  { %v1766_v1 = vld [vmem:[%s2347_s1 + $0xc0] sm:$0xff]   ;;  %1589 = vmatprep.subr.bf16.mxu0 %v1765_v0  ;;  %v1770_v5 = vld [vmem:[%s2347_s1 + $0xc8] sm:$0xff]   ;;  %v1774_v9 = vld [vmem:[%s2347_s1 + $0xd0] sm:$0xff]  }
   0x3   :  { %v1767_v2 = vld [vmem:[%s2347_s1] sm:$0xff]   ;;  %1611 = vmatprep.subr.bf16.mxu1 %v1766_v1  ;;  %v1771_v6 = vld [vmem:[%s2347_s1 + $0x8] sm:$0xff]   ;;  %v1775_v10 = vld [vmem:[%s2347_s1 + $0x10] sm:$0xff]  }
   0x4   :  { %v1768_v3 = vld [vmem:[%s2347_s1 + $0x80] sm:$0xff]   ;;  %1590 = vmatpush3.bf16.msra.mxu0 %v1767_v2  ;;  %v1772_v7 = vld [vmem:[%s2347_s1 + $0x88] sm:$0xff]   ;;  %v1776_v11 = vld [vmem:[%s2347_s1 + $0x90] sm:$0xff]  }
   0x5   :  { %1612 = vmatpush3.bf16.msra.mxu1 %v1768_v3  ;;  %1591 = vmatprep.subr.bf16.mxu0 %v1769_v4  ;;  %v1777_v12 = vld [vmem:[%s2347_s1 + $0x58] sm:$0xff]   ;;  %v1781_v16 = vld [vmem:[%s2347_s1 + $0x60] sm:$0xff]   ;;  %v1785_v20 = vld [vmem:[%s2347_s1 + $0x68] sm:$0xff]  }
   0x6   :  { %1613 = vmatprep.subr.bf16.mxu1 %v1770_v5  ;;  %v1778_v13 = vld [vmem:[%s2347_s1 + $0xd8] sm:$0xff]   ;;  %v1782_v17 = vld [vmem:[%s2347_s1 + $0xe0] sm:$0xff]   ;;  %v1786_v21 = vld [vmem:[%s2347_s1 + $0xe8] sm:$0xff]  }
   0x7   :  { %v1779_v14 = vld [vmem:[%s2347_s1 + $0x18] sm:$0xff]   ;;  %v1783_v18 = vld [vmem:[%s2347_s1 + $0x20] sm:$0xff]   ;;  %v1787_v22 = vld [vmem:[%s2347_s1 + $0x28] sm:$0xff]  }
   0x8   :  { %1592 = vmatpush3.bf16.msra.mxu0 %v1771_v6  ;;  %v1780_v15 = vld [vmem:[%s2347_s1 + $0x98] sm:$0xff]   ;;  %v1784_v19 = vld [vmem:[%s2347_s1 + $0xa0] sm:$0xff]   ;;  %v1788_v23 = vld [vmem:[%s2347_s1 + $0xa8] sm:$0xff]  }
   0x9   :  { %1614 = vmatpush3.bf16.msra.mxu1 %v1772_v7  ;;  %1593 = vmatprep.subr.bf16.mxu0 %v1773_v8  ;;  %v1789_v24 = vld [vmem:[%s2347_s1 + $0x70] sm:$0xff]   ;;  %v1793_v28 = vld [vmem:[%s2347_s1 + $0x78] sm:$0xff]   ;;  %v15_v32 = vld [vmem:[%s2348_s0] sm:$0xff] }
   0xa   :  { %1615 = vmatprep.subr.bf16.mxu1 %v1774_v9  ;;  %v1790_v25 = vld [vmem:[%s2347_s1 + $0xf0] sm:$0xff]   ;;  %v1794_v29 = vld [vmem:[%s2347_s1 + $0xf8] sm:$0xff]   ;;  %v16_v33 = vld [vmem:[%s2348_s0 + $0x8] sm:$0xff]  ;;  %v1445_v34 = vcombine.low %v15_v32, %v15_v32  ;;  %v1446_v35 = vcombine.high %v15_v32, %v15_v32 }
   0xb   :  { %v1791_v26 = vld [vmem:[%s2347_s1 + $0x30] sm:$0xff]   ;;  %v1795_v30 = vld [vmem:[%s2347_s1 + $0x38] sm:$0xff]   ;;  %v1447_v36 = vcombine.low %v16_v33, %v16_v33  ;;  %v1448_v37 = vcombine.high %v16_v33, %v16_v33  ;;  %v1801_v38 = vld [vmem:[%s2347_s1 + $0x140] sm:$0xff]  }
   0xc   :  { %1594 = vmatpush3.bf16.msra.mxu0 %v1775_v10  ;;  %v1792_v27 = vld [vmem:[%s2347_s1 + $0xb0] sm:$0xff]   ;;  %v1796_v31 = vld [vmem:[%s2347_s1 + $0xb8] sm:$0xff]   ;;  %v1802_v39 = vld [vmem:[%s2347_s1 + $0x1c0] sm:$0xff]   ;;  %1142 = vmatprep.mubr.bf16.mxu0 %v1446_v35 }
   0xd   :  { %1616 = vmatpush3.bf16.msra.mxu1 %v1776_v11  ;;  %1595 = vmatprep.subr.bf16.mxu0 %v1777_v12  ;;  %v1803_v40 = vld [vmem:[%s2347_s1 + $0x100] sm:$0xff]   ;;  %v1805_v42 = vld [vmem:[%s2347_s1 + $0x148] sm:$0xff]   ;;  %v1809_v46 = vld [vmem:[%s2347_s1 + $0x150] sm:$0xff]  }
   0xe   :  { %1617 = vmatprep.subr.bf16.mxu1 %v1778_v13  ;;  %1182 = vmatprep.mubr.bf16.mxu1 %v1448_v37  ;;  %v1804_v41 = vld [vmem:[%s2347_s1 + $0x180] sm:$0xff]   ;;  %v1806_v43 = vld [vmem:[%s2347_s1 + $0x1c8] sm:$0xff]   ;;  %v1810_v47 = vld [vmem:[%s2347_s1 + $0x1d0] sm:$0xff]  }
   0xf   :  { %v1807_v44 = vld [vmem:[%s2347_s1 + $0x108] sm:$0xff]   ;;  %v1811_v48 = vld [vmem:[%s2347_s1 + $0x110] sm:$0xff]   ;;  %v1813_v50 = vld [vmem:[%s2347_s1 + $0x158] sm:$0xff]  }
  0x10   :  { %1596 = vmatpush3.bf16.msra.mxu0 %v1779_v14  ;;  %v1808_v45 = vld [vmem:[%s2347_s1 + $0x188] sm:$0xff]   ;;  %v1812_v49 = vld [vmem:[%s2347_s1 + $0x190] sm:$0xff]   ;;  %v1814_v51 = vld [vmem:[%s2347_s1 + $0x1d8] sm:$0xff]  }
  0x11   :  { %1618 = vmatpush3.bf16.msra.mxu1 %v1780_v15  ;;  %1597 = vmatprep.subr.bf16.mxu0 %v1781_v16  ;;  %v1815_v52 = vld [vmem:[%s2347_s1 + $0x118] sm:$0xff]   ;;  %v1817_v54 = vld [vmem:[%s2347_s1 + $0x160] sm:$0xff]   ;;  %v1821_v58 = vld [vmem:[%s2347_s1 + $0x168] sm:$0xff]  }
  0x12   :  { %1619 = vmatprep.subr.bf16.mxu1 %v1782_v17  ;;  %v1816_v53 = vld [vmem:[%s2347_s1 + $0x198] sm:$0xff]   ;;  %v1818_v55 = vld [vmem:[%s2347_s1 + $0x1e0] sm:$0xff]   ;;  %v1822_v59 = vld [vmem:[%s2347_s1 + $0x1e8] sm:$0xff]  }
  0x13   :  { %v1819_v56 = vld [vmem:[%s2347_s1 + $0x120] sm:$0xff]   ;;  %v1823_v60 = vld [vmem:[%s2347_s1 + $0x128] sm:$0xff]   ;;  %v1825_v62 = vld [vmem:[%s2347_s1 + $0x170] sm:$0xff]  }
  0x14   :  { %1598 = vmatpush3.bf16.msra.mxu0 %v1783_v18  ;;  %v1820_v57 = vld [vmem:[%s2347_s1 + $0x1a0] sm:$0xff]   ;;  %v1824_v61 = vld [vmem:[%s2347_s1 + $0x1a8] sm:$0xff]   ;;  %v1826_v63 = vld [vmem:[%s2347_s1 + $0x1f0] sm:$0xff]  }
  0x15   :  { %1620 = vmatpush3.bf16.msra.mxu1 %v1784_v19  ;;  %1599 = vmatprep.subr.bf16.mxu0 %v1785_v20  ;;  %v1827_v0 = vld [vmem:[%s2347_s1 + $0x130] sm:$0xff]   ;;  %v1829_v2 = vld [vmem:[%s2347_s1 + $0x178] sm:$0xff]   ;;  %v1837_v12 = vld [vmem:[%s2347_s1 + $0x240] sm:$0xff]  }
  0x16   :  { %1621 = vmatprep.subr.bf16.mxu1 %v1786_v21  ;;  %v1828_v1 = vld [vmem:[%s2347_s1 + $0x1b0] sm:$0xff]   ;;  %v1830_v3 = vld [vmem:[%s2347_s1 + $0x1f8] sm:$0xff]   ;;  %v1838_v13 = vld [vmem:[%s2347_s1 + $0x2c0] sm:$0xff]  }
  0x17   :  { %v1831_v4 = vld [vmem:[%s2347_s1 + $0x138] sm:$0xff]   ;;  %v17_v6 = vld [vmem:[%s2348_s0 + $0x10] sm:$0xff]  ;;  %v1839_v14 = vld [vmem:[%s2347_s1 + $0x200] sm:$0xff]  }
  0x18   :  { %1600 = vmatpush3.bf16.msra.mxu0 %v1787_v22  ;;  %v1832_v5 = vld [vmem:[%s2347_s1 + $0x1b8] sm:$0xff]   ;;  %v1449_v7 = vcombine.low %v17_v6, %v17_v6  ;;  %v1450_v8 = vcombine.high %v17_v6, %v17_v6  ;;  %v1840_v15 = vld [vmem:[%s2347_s1 + $0x280] sm:$0xff]   ;;  %v1841_v16 = vld [vmem:[%s2347_s1 + $0x248] sm:$0xff]  }
  0x19   :  { %1622 = vmatpush3.bf16.msra.mxu1 %v1788_v23  ;;  %1601 = vmatprep.subr.bf16.mxu0 %v1789_v24  ;;  %v18_v9 = vld [vmem:[%s2348_s0 + $0x18] sm:$0xff]  ;;  %v1842_v17 = vld [vmem:[%s2347_s1 + $0x2c8] sm:$0xff]   ;;  %v1845_v20 = vld [vmem:[%s2347_s1 + $0x250] sm:$0xff]  }
  0x1a   :  { %1623 = vmatprep.subr.bf16.mxu1 %v1790_v25  ;;  %v1451_v10 = vcombine.low %v18_v9, %v18_v9  ;;  %v1452_v11 = vcombine.high %v18_v9, %v18_v9  ;;  %v1843_v18 = vld [vmem:[%s2347_s1 + $0x208] sm:$0xff]   ;;  %v1846_v21 = vld [vmem:[%s2347_s1 + $0x2d0] sm:$0xff]   ;;  %v1849_v24 = vld [vmem:[%s2347_s1 + $0x258] sm:$0xff]  }
  0x1b   :  { %v1844_v19 = vld [vmem:[%s2347_s1 + $0x288] sm:$0xff]   ;;  %v1847_v22 = vld [vmem:[%s2347_s1 + $0x210] sm:$0xff]   ;;  %v1850_v25 = vld [vmem:[%s2347_s1 + $0x2d8] sm:$0xff]  }
  0x1c   :  { %1602 = vmatpush3.bf16.msra.mxu0 %v1791_v26  ;;  %v1848_v23 = vld [vmem:[%s2347_s1 + $0x290] sm:$0xff]   ;;  %v1851_v26 = vld [vmem:[%s2347_s1 + $0x218] sm:$0xff]   ;;  %v1857_v32 = vld [vmem:[%s2347_s1 + $0x268] sm:$0xff]  }
  0x1d   :  { %1624 = vmatpush3.bf16.msra.mxu1 %v1792_v27  ;;  %1603 = vmatprep.subr.bf16.mxu0 %v1793_v28  ;;  %v1852_v27 = vld [vmem:[%s2347_s1 + $0x298] sm:$0xff]   ;;  %v1853_v28 = vld [vmem:[%s2347_s1 + $0x260] sm:$0xff]   ;;  %v1858_v33 = vld [vmem:[%s2347_s1 + $0x2e8] sm:$0xff]  }
  0x1e   :  { %1625 = vmatprep.subr.bf16.mxu1 %v1794_v29  ;;  %v1854_v29 = vld [vmem:[%s2347_s1 + $0x2e0] sm:$0xff]   ;;  %v1860_v35 = vld [vmem:[%s2347_s1 + $0x2a8] sm:$0xff]   ;;  %v1862_v37 = vld [vmem:[%s2347_s1 + $0x2f0] sm:$0xff]  }
  0x1f   :  { %v1893_v6 = vld [vmem:[%s2347_s1 + $0x368] sm:$0xff]  }
  0x20   :  { %1604 = vmatpush3.bf16.msra.mxu0 %v1795_v30  ;;  %v1855_v30 = vld [vmem:[%s2347_s1 + $0x220] sm:$0xff]   ;;  %v1896_v9 = vld [vmem:[%s2347_s1 + $0x3a8] sm:$0xff]  }
  0x21   :  { %1626 = vmatpush3.bf16.msra.mxu1 %v1796_v31  ;;  %1633 = vmatprep.subr.bf16.mxu0 %v1801_v38  ;;  %v1856_v31 = vld [vmem:[%s2347_s1 + $0x2a0] sm:$0xff]   ;;  %v1863_v38 = vld [vmem:[%s2347_s1 + $0x230] sm:$0xff]  }
  0x22   :  { %1655 = vmatprep.subr.bf16.mxu1 %v1802_v39  ;;  %v1864_v39 = vld [vmem:[%s2347_s1 + $0x2b0] sm:$0xff]  }
  0x23   :  { %1143 = vmatmul.mubr.bf16.vlgmr.msra.gmra.mrb[0].mxu0 %v1445_v34  ;;  %v1859_v34 = vld [vmem:[%s2347_s1 + $0x228] sm:$0xff]  }
  0x24   :  { %1183 = vmatmul.mubr.bf16.vlgmr.msra.gmra.mrb[0].mxu1 %v1447_v36  ;;  %1634 = vmatpush3.bf16.msra.mxu0 %v1803_v40  ;;  %v1861_v36 = vld [vmem:[%s2347_s1 + $0x270] sm:$0xff]   ;;  %v1865_v40 = vld [vmem:[%s2347_s1 + $0x278] sm:$0xff]  }
  0x25   :  { %1656 = vmatpush3.bf16.msra.mxu1 %v1804_v41  ;;  %1635 = vmatprep.subr.bf16.mxu0 %v1805_v42  ;;  %v1866_v41 = vld [vmem:[%s2347_s1 + $0x2f8] sm:$0xff]  }
  0x26   :  { %1657 = vmatprep.subr.bf16.mxu1 %v1806_v43  ;;  %1222 = vmatprep.mubr.bf16.mxu0 %v1450_v8  ;;  %v1867_v42 = vld [vmem:[%s2347_s1 + $0x238] sm:$0xff]   ;;  %v1895_v8 = vld [vmem:[%s2347_s1 + $0x328] sm:$0xff]  }
  0x27   :  { %1262 = vmatprep.mubr.bf16.mxu1 %v1452_v11  ;;  %v1868_v43 = vld [vmem:[%s2347_s1 + $0x2b8] sm:$0xff]   ;;  %v1898_v11 = vld [vmem:[%s2347_s1 + $0x3f0] sm:$0xff]  }
  0x28   :  { %1636 = vmatpush3.bf16.msra.mxu0 %v1807_v44  ;;  %v19_v44 = vld [vmem:[%s2348_s0 + $0x20] sm:$0xff] }
  0x29   :  { %1658 = vmatpush3.bf16.msra.mxu1 %v1808_v45  ;;  %1637 = vmatprep.subr.bf16.mxu0 %v1809_v46  ;;  %v20_v45 = vld [vmem:[%s2348_s0 + $0x28] sm:$0xff]  ;;  %v1453_v46 = vcombine.low %v19_v44, %v19_v44 }
  0x2a   :  { %1659 = vmatprep.subr.bf16.mxu1 %v1810_v47  ;;  %v1454_v47 = vcombine.high %v19_v44, %v19_v44 }
  0x2c   :  { %1638 = vmatpush3.bf16.msra.mxu0 %v1811_v48  ;;  %v1455_v48 = vcombine.low %v20_v45, %v20_v45 }
  0x2d   :  { %1660 = vmatpush3.bf16.msra.mxu1 %v1812_v49  ;;  %1639 = vmatprep.subr.bf16.mxu0 %v1813_v50  ;;  %v1456_v49 = vcombine.high %v20_v45, %v20_v45  ;;  %v1873_v50 = vld [vmem:[%s2347_s1 + $0x340] sm:$0xff]  }
  0x2e   :  { %1661 = vmatprep.subr.bf16.mxu1 %v1814_v51  ;;  %v1874_v51 = vld [vmem:[%s2347_s1 + $0x3c0] sm:$0xff]  }
  0x30   :  { %1640 = vmatpush3.bf16.msra.mxu0 %v1815_v52  ;;  %v1875_v52 = vld [vmem:[%s2347_s1 + $0x300] sm:$0xff]  }
  0x31   :  { %1662 = vmatpush3.bf16.msra.mxu1 %v1816_v53  ;;  %1641 = vmatprep.subr.bf16.mxu0 %v1817_v54  ;;  %v1876_v53 = vld [vmem:[%s2347_s1 + $0x380] sm:$0xff]   ;;  %v1877_v54 = vld [vmem:[%s2347_s1 + $0x348] sm:$0xff]  }
  0x32   :  { %1663 = vmatprep.subr.bf16.mxu1 %v1818_v55  ;;  %v1878_v55 = vld [vmem:[%s2347_s1 + $0x3c8] sm:$0xff]  }
  0x34   :  { %1642 = vmatpush3.bf16.msra.mxu0 %v1819_v56  ;;  %v1879_v56 = vld [vmem:[%s2347_s1 + $0x308] sm:$0xff]  }
  0x35   :  { %1664 = vmatpush3.bf16.msra.mxu1 %v1820_v57  ;;  %1643 = vmatprep.subr.bf16.mxu0 %v1821_v58  ;;  %v1880_v57 = vld [vmem:[%s2347_s1 + $0x388] sm:$0xff]   ;;  %v1881_v58 = vld [vmem:[%s2347_s1 + $0x350] sm:$0xff]  }
  0x36   :  { %1665 = vmatprep.subr.bf16.mxu1 %v1822_v59  ;;  %v1882_v59 = vld [vmem:[%s2347_s1 + $0x3d0] sm:$0xff]  }
  0x38   :  { %1644 = vmatpush3.bf16.msra.mxu0 %v1823_v60  ;;  %v1883_v60 = vld [vmem:[%s2347_s1 + $0x310] sm:$0xff]  }
  0x39   :  { %1666 = vmatpush3.bf16.msra.mxu1 %v1824_v61  ;;  %1645 = vmatprep.subr.bf16.mxu0 %v1825_v62  ;;  %v1884_v61 = vld [vmem:[%s2347_s1 + $0x390] sm:$0xff]   ;;  %v1885_v62 = vld [vmem:[%s2347_s1 + $0x358] sm:$0xff]  }
  0x3a   :  { %1667 = vmatprep.subr.bf16.mxu1 %v1826_v63  ;;  %v1886_v63 = vld [vmem:[%s2347_s1 + $0x3d8] sm:$0xff]  }
  0x3c   :  { %1646 = vmatpush3.bf16.msra.mxu0 %v1827_v0  ;;  %v1887_v0 = vld [vmem:[%s2347_s1 + $0x318] sm:$0xff]  }
  0x3d   :  { %1668 = vmatpush3.bf16.msra.mxu1 %v1828_v1  ;;  %1647 = vmatprep.subr.bf16.mxu0 %v1829_v2  ;;  %v1888_v1 = vld [vmem:[%s2347_s1 + $0x398] sm:$0xff]   ;;  %v1889_v2 = vld [vmem:[%s2347_s1 + $0x360] sm:$0xff]  }
  0x3e   :  { %1669 = vmatprep.subr.bf16.mxu1 %v1830_v3  ;;  %v1890_v3 = vld [vmem:[%s2347_s1 + $0x3e0] sm:$0xff]  }
  0x40   :  { %1648 = vmatpush3.bf16.msra.mxu0 %v1831_v4  ;;  %v1891_v4 = vld [vmem:[%s2347_s1 + $0x320] sm:$0xff]  }
  0x41   :  { %1670 = vmatpush3.bf16.msra.mxu1 %v1832_v5  ;;  %1677 = vmatprep.subr.bf16.mxu0 %v1837_v12  ;;  %v1892_v5 = vld [vmem:[%s2347_s1 + $0x3a0] sm:$0xff]   ;;  %v1899_v12 = vld [vmem:[%s2347_s1 + $0x330] sm:$0xff]  }
  0x42   :  { %1699 = vmatprep.subr.bf16.mxu1 %v1838_v13  ;;  %v1900_v13 = vld [vmem:[%s2347_s1 + $0x3b0] sm:$0xff]  }
  0x43   :  { %1223 = vmatmul.mubr.bf16.vlgmr.msra.gmra.mrb[4].mxu0 %v1449_v7  ;;  %v1894_v7 = vld [vmem:[%s2347_s1 + $0x3e8] sm:$0xff]  }
  0x44   :  { %1263 = vmatmul.mubr.bf16.vlgmr.msra.gmra.mrb[4].mxu1 %v1451_v10  ;;  %1678 = vmatpush3.bf16.msra.mxu0 %v1839_v14  ;;  %v1897_v10 = vld [vmem:[%s2347_s1 + $0x370] sm:$0xff]   ;;  %v1901_v14 = vld [vmem:[%s2347_s1 + $0x378] sm:$0xff]  }
  0x45   :  { %1700 = vmatpush3.bf16.msra.mxu1 %v1840_v15  ;;  %1679 = vmatprep.subr.bf16.mxu0 %v1841_v16  ;;  %v1902_v15 = vld [vmem:[%s2347_s1 + $0x3f8] sm:$0xff]  }
  0x46   :  { %1701 = vmatprep.subr.bf16.mxu1 %v1842_v17  ;;  %1302 = vmatprep.mubr.bf16.mxu0 %v1454_v47  ;;  %v1903_v16 = vld [vmem:[%s2347_s1 + $0x338] sm:$0xff]  }
  0x47   :  { %1342 = vmatprep.mubr.bf16.mxu1 %v1456_v49  ;;  %v1904_v17 = vld [vmem:[%s2347_s1 + $0x3b8] sm:$0xff]  }
  0x48   :  { %1680 = vmatpush3.bf16.msra.mxu0 %v1843_v18  ;;  %v21_v18 = vld [vmem:[%s2348_s0 + $0x30] sm:$0xff] }
  0x49   :  { %1702 = vmatpush3.bf16.msra.mxu1 %v1844_v19  ;;  %1681 = vmatprep.subr.bf16.mxu0 %v1845_v20  ;;  %v22_v19 = vld [vmem:[%s2348_s0 + $0x38] sm:$0xff]  ;;  %v1457_v20 = vcombine.low %v21_v18, %v21_v18 }
  0x4a   :  { %1703 = vmatprep.subr.bf16.mxu1 %v1846_v21  ;;  %v1458_v21 = vcombine.high %v21_v18, %v21_v18 }
  0x4c   :  { %1682 = vmatpush3.bf16.msra.mxu0 %v1847_v22  ;;  %v1459_v22 = vcombine.low %v22_v19, %v22_v19 }
  0x4d   :  { %1704 = vmatpush3.bf16.msra.mxu1 %v1848_v23  ;;  %1683 = vmatprep.subr.bf16.mxu0 %v1849_v24  ;;  %v1460_v23 = vcombine.high %v22_v19, %v22_v19 }
  0x4e   :  { %1705 = vmatprep.subr.bf16.mxu1 %v1850_v25 }
  0x50   :  { %1684 = vmatpush3.bf16.msra.mxu0 %v1851_v26  ;;  %v1444_v26 = vld [vmem:[%s2349_s2] ss:$0 sm:$0xff] }
  0x51   :  { %1706 = vmatpush3.bf16.msra.mxu1 %v1852_v27  ;;  %1685 = vmatprep.subr.bf16.mxu0 %v1853_v28 }
  0x52   :  { %1707 = vmatprep.subr.bf16.mxu1 %v1854_v29 }
  0x54   :  { %1686 = vmatpush3.bf16.msra.mxu0 %v1855_v30 }
  0x55   :  { %1708 = vmatpush3.bf16.msra.mxu1 %v1856_v31  ;;  %1687 = vmatprep.subr.bf16.mxu0 %v1857_v32 }
  0x56   :  { %1709 = vmatprep.subr.bf16.mxu1 %v1858_v33 }
  0x58   :  { %1688 = vmatpush3.bf16.msra.mxu0 %v1859_v34 }
  0x59   :  { %1710 = vmatpush3.bf16.msra.mxu1 %v1860_v35  ;;  %1689 = vmatprep.subr.bf16.mxu0 %v1861_v36 }
  0x5a   :  { %1711 = vmatprep.subr.bf16.mxu1 %v1862_v37 }
  0x5c   :  { %1690 = vmatpush3.bf16.msra.mxu0 %v1863_v38 }
  0x5d   :  { %1712 = vmatpush3.bf16.msra.mxu1 %v1864_v39  ;;  %1691 = vmatprep.subr.bf16.mxu0 %v1865_v40 }
  0x5e   :  { %1713 = vmatprep.subr.bf16.mxu1 %v1866_v41 }
  0x60   :  { %1692 = vmatpush3.bf16.msra.mxu0 %v1867_v42 }
  0x61   :  { %1714 = vmatpush3.bf16.msra.mxu1 %v1868_v43  ;;  %1721 = vmatprep.subr.bf16.mxu0 %v1873_v50 }
  0x62   :  { %1743 = vmatprep.subr.bf16.mxu1 %v1874_v51 }
  0x63   :  { %1303 = vmatmul.mubr.bf16.vlgmr.msra.gmra.mrb[8].mxu0 %v1453_v46 }
  0x64   :  { %1343 = vmatmul.mubr.bf16.vlgmr.msra.gmra.mrb[8].mxu1 %v1455_v48  ;;  %1722 = vmatpush3.bf16.msra.mxu0 %v1875_v52 }
  0x65   :  { %1744 = vmatpush3.bf16.msra.mxu1 %v1876_v53  ;;  %1723 = vmatprep.subr.bf16.mxu0 %v1877_v54 }
  0x66   :  { %1745 = vmatprep.subr.bf16.mxu1 %v1878_v55  ;;  %1382 = vmatprep.mubr.bf16.mxu0 %v1458_v21 }
  0x67   :  { %1422 = vmatprep.mubr.bf16.mxu1 %v1460_v23 }
  0x68   :  { %1724 = vmatpush3.bf16.msra.mxu0 %v1879_v56 }
  0x69   :  { %1746 = vmatpush3.bf16.msra.mxu1 %v1880_v57  ;;  %1725 = vmatprep.subr.bf16.mxu0 %v1881_v58 }
  0x6a   :  { %1747 = vmatprep.subr.bf16.mxu1 %v1882_v59 }
  0x6c   :  { %1726 = vmatpush3.bf16.msra.mxu0 %v1883_v60 }
  0x6d   :  { %1748 = vmatpush3.bf16.msra.mxu1 %v1884_v61  ;;  %1727 = vmatprep.subr.bf16.mxu0 %v1885_v62 }
  0x6e   :  { %1749 = vmatprep.subr.bf16.mxu1 %v1886_v63 }
  0x70   :  { %1728 = vmatpush3.bf16.msra.mxu0 %v1887_v0 }
  0x71   :  { %1750 = vmatpush3.bf16.msra.mxu1 %v1888_v1  ;;  %1729 = vmatprep.subr.bf16.mxu0 %v1889_v2 }
  0x72   :  { %1751 = vmatprep.subr.bf16.mxu1 %v1890_v3 }
  0x74   :  { %1730 = vmatpush3.bf16.msra.mxu0 %v1891_v4 }
  0x75   :  { %1752 = vmatpush3.bf16.msra.mxu1 %v1892_v5  ;;  %1731 = vmatprep.subr.bf16.mxu0 %v1893_v6 }
  0x76   :  { %1753 = vmatprep.subr.bf16.mxu1 %v1894_v7 }
  0x78   :  { %1732 = vmatpush3.bf16.msra.mxu0 %v1895_v8 }
  0x79   :  { %1754 = vmatpush3.bf16.msra.mxu1 %v1896_v9  ;;  %1733 = vmatprep.subr.bf16.mxu0 %v1897_v10 }
  0x7a   :  { %1755 = vmatprep.subr.bf16.mxu1 %v1898_v11 }
  0x7c   :  { %1734 = vmatpush3.bf16.msra.mxu0 %v1899_v12 }
  0x7d   :  { %1756 = vmatpush3.bf16.msra.mxu1 %v1900_v13  ;;  %1735 = vmatprep.subr.bf16.mxu0 %v1901_v14 }
  0x7e   :  { %1757 = vmatprep.subr.bf16.mxu1 %v1902_v15 }
  0x80   :  { %1736 = vmatpush3.bf16.msra.mxu0 %v1903_v16 }
  0x81   :  { %1758 = vmatpush3.bf16.msra.mxu1 %v1904_v17 }
  0x83   :  { %1383 = vmatmul.mubr.bf16.vlgmr.msra.gmra.mrb[12].mxu0 %v1457_v20 }
  0x84   :  { %1423 = vmatmul.mubr.bf16.vlgmr.msra.gmra.mrb[12].mxu1 %v1459_v22 }
  0xf6   :  { %v1605_v24 = vpop.f32.mrb[0].mxu0 }
  0xf7   :  { %v1627_v25 = vpop.f32.mrb[0].mxu1  ;;  %v1606_v27 = vpop.f32.mrb[1].mxu0 }
  0xf8   :  { %v1628_v28 = vpop.f32.mrb[1].mxu1  ;;  %v1607_v29 = vadd.f32 %v1606_v27, %v1605_v24  ;;  %v1608_v31 = vpop.f32.mrb[2].mxu0 }
  0xf9   :  { %v1629_v30 = vadd.f32 %v1628_v28, %v1627_v25  ;;  %v1630_v32 = vpop.f32.mrb[2].mxu1  ;;  %v1609_v33 = vpop.f32.mrb[3].mxu0 }
  0xfa   :  { %v1631_v34 = vpop.f32.mrb[3].mxu1  ;;  %v1145_v35 = vadd.f32 %v1607_v29, %v1444_v26 }
  0xfc   :  { %v1185_v36 = vadd.f32 %v1629_v30, %v1145_v35 }
 0x116   :  { %v1649_v37 = vpop.f32.mrb[4].mxu0 }
 0x117   :  { %v1671_v38 = vpop.f32.mrb[4].mxu1  ;;  %v1650_v39 = vpop.f32.mrb[5].mxu0 }
 0x118   :  { %v1672_v40 = vpop.f32.mrb[5].mxu1  ;;  %v1651_v41 = vadd.f32 %v1650_v39, %v1649_v37  ;;  %v1652_v43 = vpop.f32.mrb[6].mxu0 }
 0x119   :  { %v1673_v42 = vadd.f32 %v1672_v40, %v1671_v38  ;;  %v1674_v44 = vpop.f32.mrb[6].mxu1  ;;  %v1653_v45 = vpop.f32.mrb[7].mxu0 }
 0x11a   :  { %v1675_v46 = vpop.f32.mrb[7].mxu1  ;;  %v1225_v47 = vadd.f32 %v1651_v41, %v1185_v36 }
 0x11c   :  { %v1265_v48 = vadd.f32 %v1673_v42, %v1225_v47 }
 0x136   :  { %v1693_v49 = vpop.f32.mrb[8].mxu0 }
 0x137   :  { %v1715_v50 = vpop.f32.mrb[8].mxu1  ;;  %v1694_v51 = vpop.f32.mrb[9].mxu0 }
 0x138   :  { %v1695_v52 = vadd.f32 %v1694_v51, %v1693_v49  ;;  %v1716_v53 = vpop.f32.mrb[9].mxu1  ;;  %v1696_v54 = vpop.f32.mrb[10].mxu0 }
 0x139   :  { %v1717_v55 = vadd.f32 %v1716_v53, %v1715_v50  ;;  %v1718_v56 = vpop.f32.mrb[10].mxu1  ;;  %v1697_v57 = vpop.f32.mrb[11].mxu0 }
 0x13a   :  { %v1305_v58 = vadd.f32 %v1695_v52, %v1265_v48  ;;  %v1719_v59 = vpop.f32.mrb[11].mxu1 }
 0x13c   :  { %v1345_v60 = vadd.f32 %v1717_v55, %v1305_v58 }
 0x156   :  { %v1737_v61 = vpop.f32.mrb[12].mxu0 }
 0x157   :  { %v1759_v62 = vpop.f32.mrb[12].mxu1  ;;  %v1738_v63 = vpop.f32.mrb[13].mxu0 }
 0x158   :  { %v1739_v0 = vadd.f32 %v1738_v63, %v1737_v61  ;;  %v1760_v1 = vpop.f32.mrb[13].mxu1  ;;  %v1740_v2 = vpop.f32.mrb[14].mxu0 }
 0x159   :  { %v1761_v3 = vadd.f32 %v1760_v1, %v1759_v62  ;;  %v1762_v4 = vpop.f32.mrb[14].mxu1  ;;  %v1741_v5 = vpop.f32.mrb[15].mxu0 }
 0x15a   :  { %v1385_v6 = vadd.f32 %v1739_v0, %v1345_v60  ;;  %v1763_v7 = vpop.f32.mrb[15].mxu1 }
 0x15c   :  { %v1425_v8 = vadd.f32 %v1761_v3, %v1385_v6 }
 0x15e   :  { %1430 = vmax.xlane.f32.xlu0 %v1425_v8 }
 0x1eb   :  { %v1431_v9 = vpop.xlane.xlu0 %1430 }
 0x1ec   :  { %v1432_v10 = vsub.f32 %v1425_v8, %v1431_v9 }
 0x1ee   :  { %v1433_v11 = vmul.f32 1.442695, %v1432_v10 }
 0x1f0   :  { %1909 = vpow2.f32 %v1433_v11 }
 0x1fa   :  { %v1910_v12 = vpop.eup %1909 }
 0x1fb   :  { %1435 = vadd.xlane.f32.xlu0 %v1910_v12 }
 0x288   :  { %v1436_v13 = vpop.xlane.xlu0 %1435 }
 0x289   :  { %1911 = vrcp.f32 %v1436_v13 }
 0x293   :  { %v1912_v14 = vpop.eup %1911 }
 0x294   :  { %v1438_v15 = vmul.f32 %v1912_v14, %v1910_v12 }
 0x296   :  { %1439 = vst [vmem:[%s2350_s3] sm:$0xff] %v1438_v15 }

</bundles_post_ra>
